<compile_context>
chip_gen: v5e
topology: v5e:2x2
jax: 0.10.0
libtpu: 0.0.40
codegen_flags: <defaults>
</compile_context>

<pallas_src>
import functools
import math

import jax
import jax.numpy as jnp
from jax.experimental import pallas as pl
from jax.experimental.pallas import tpu as pltpu


# ---------------------------------------------------------------------------
# Tile helper: largest tile <= target that is a multiple of `align` and divides
# `dim`; falls back to the full dimension (always a legal BlockSpec block).
# ---------------------------------------------------------------------------
def _pick_tile(dim, target, align):
    if dim <= target:
        return dim
    t = (target // align) * align
    while t >= align:
        if dim % t == 0:
            return t
        t -= align
    return dim


# ---------------------------------------------------------------------------
# Kernel 1: tiled dense layer  y = x @ W + b
# ---------------------------------------------------------------------------
def _linear_kernel(x_ref, w_ref, b_ref, o_ref, acc_ref):
    k = pl.program_id(2)

    @pl.when(k == 0)
    def _():
        acc_ref[...] = jnp.zeros_like(acc_ref)

    acc_ref[...] += jnp.dot(x_ref[...], w_ref[...],
                            preferred_element_type=jnp.float32)

    @pl.when(k == pl.num_programs(2) - 1)
    def _():
        o_ref[...] = (acc_ref[...] + b_ref[...].astype(jnp.float32)).astype(o_ref.dtype)


def linear(x2d, w, b, out_dtype=None):
    """x2d: (M, Din), w: (Din, Dout), b: (Dout,) -> (M, Dout)."""
    M, Din = x2d.shape
    Dout = w.shape[1]
    out_dtype = out_dtype or x2d.dtype

    # Large tiles (85%+ of HBM roofline per measured Pallas data) that still fit
    # comfortably under every generation's VMEM with double buffering.
    tm = _pick_tile(M, 512, 8)
    tn = _pick_tile(Dout, 512, 128)
    tk = _pick_tile(Din, 1024, 128)
    grid = (M // tm, Dout // tn, Din // tk)

    in_bytes = jnp.dtype(x2d.dtype).itemsize
    out_bytes = jnp.dtype(out_dtype).itemsize
    # 2x double-buffered inputs + 2x output + f32 accumulator, with headroom;
    # capped well under v7x's 64 MiB physical VMEM (v5e/v6e have 128 MiB).
    footprint = (2 * (tm * tk + tk * tn + tn) * in_bytes
                 + 2 * tm * tn * out_bytes + tm * tn * 4)
    vmem_limit = int(min(60 * 2**20, max(32 * 2**20, footprint * 2)))

    cost = pl.CostEstimate(
        flops=2 * M * Dout * Din,
        transcendentals=0,
        bytes_accessed=in_bytes * (M * Din + Din * Dout + Dout) + out_bytes * M * Dout,
    )

    return pl.pallas_call(
        _linear_kernel,
        out_shape=jax.ShapeDtypeStruct((M, Dout), out_dtype),
        grid=grid,
        in_specs=[
            pl.BlockSpec((tm, tk), lambda i, j, k: (i, k)),
            pl.BlockSpec((tk, tn), lambda i, j, k: (k, j)),
            # Bias block index depends only on j; k is the innermost axis, so the
            # already-resident (1, tn) block is reused across the whole K loop
            # instead of being re-DMA'd each step.
            pl.BlockSpec((1, tn), lambda i, j, k: (0, j)),
        ],
        out_specs=pl.BlockSpec((tm, tn), lambda i, j, k: (i, j)),
        scratch_shapes=[pltpu.VMEM((tm, tn), jnp.float32)],
        compiler_params=pltpu.CompilerParams(
            dimension_semantics=("parallel", "parallel", "arbitrary"),
            vmem_limit_bytes=vmem_limit,
        ),
        cost_estimate=cost,
    )(x2d, w, b.reshape(1, Dout))


# ---------------------------------------------------------------------------
# Kernel 2: flash (online-softmax) scaled-dot-product attention.
# One invocation handles one (batch, head-group, q-tile, kv-tile) cell; the
# kv-tile grid axis is "arbitrary" and carries m/l/acc state in VMEM scratch,
# so the (S, S) scores never materialize.
# ---------------------------------------------------------------------------
def _flash_attention_kernel(q_ref, k_ref, v_ref, o_ref, m_sc, l_sc, acc_sc, *,
                            hb, d_k, q_off, k_off, v_off):
    ki = pl.program_id(3)
    scale = 1.0 / math.sqrt(d_k)

    @pl.when(ki == 0)
    def _():
        m_sc[...] = jnp.full(m_sc.shape, -jnp.inf, dtype=m_sc.dtype)
        l_sc[...] = jnp.zeros(l_sc.shape, dtype=l_sc.dtype)
        acc_sc[...] = jnp.zeros(acc_sc.shape, dtype=acc_sc.dtype)

    for hh in range(hb):  # static unroll over the heads of this head group
        q = q_ref[:, q_off + hh * d_k: q_off + (hh + 1) * d_k]
        k = k_ref[:, k_off + hh * d_k: k_off + (hh + 1) * d_k]
        v = v_ref[:, v_off + hh * d_k: v_off + (hh + 1) * d_k]

        # q @ k^T without materializing a transpose: contract last axes of both.
        s = jax.lax.dot_general(
            q, k, dimension_numbers=(((1,), (1,)), ((), ())),
            preferred_element_type=jnp.float32) * scale

        m_prev = m_sc[hh]                                   # (tq, 1)
        l_prev = l_sc[hh]
        m_new = jnp.maximum(m_prev, jnp.max(s, axis=-1, keepdims=True))
        alpha = jnp.exp(m_prev - m_new)
        p = jnp.exp(s - m_new)
        l_sc[hh] = alpha * l_prev + jnp.sum(p, axis=-1, keepdims=True)
        m_sc[hh] = m_new

        col = slice(hh * d_k, (hh + 1) * d_k)
        acc_sc[:, col] = alpha * acc_sc[:, col] + jnp.dot(
            p.astype(v.dtype), v, preferred_element_type=jnp.float32)

    @pl.when(ki == pl.num_programs(3) - 1)
    def _():
        for hh in range(hb):
            col = slice(hh * d_k, (hh + 1) * d_k)
            # Exact reciprocal: runs once per q tile, negligible cost, and keeps
            # attention rows summing to 1 at f32 precision.
            acc_sc[:, col] = acc_sc[:, col] * pl.reciprocal(l_sc[hh], approx=False)
        o_ref[...] = acc_sc[...].astype(o_ref.dtype)         # one lane-dense store


def flash_attention(q_src, k_src, v_src, *, q_base, k_base, v_base, h, d_model,
                    out_dtype=None):
    """Attention over all heads, heads concatenated on the last axis.

    q_src: (B, Sq, Wq) whose columns [q_base, q_base + d_model) hold the per-head
    query projections (head i at q_base + i*d_k); k_src / v_src likewise (they
    may alias q_src / each other, e.g. a fused q|k|v or k|v tensor).
    Returns (B, Sq, d_model) in (B, S, D) layout — no wrapper transposes needed.
    """
    B, Sq, _ = q_src.shape
    Sk = k_src.shape[1]
    D = d_model
    d_k = D // h
    out_dtype = out_dtype or q_src.dtype

    tq = _pick_tile(Sq, 256, 8)      # >=256-row q tiles keep the MXU filled
    tkv = _pick_tile(Sk, 512, 128)   # kv streamed in 128-aligned row tiles

    gw = math.lcm(d_k, 128)          # lane-aligned head-group column width
    aligned = (D % gw == 0 and q_base % gw == 0
               and k_base % gw == 0 and v_base % gw == 0)
    if aligned:
        n_grp = D // gw
        hb = gw // d_k
        q_w = k_w = v_w = o_w = gw
        q_cb, k_cb, v_cb = q_base // gw, k_base // gw, v_base // gw
        q_off = k_off = v_off = 0
    else:
        # Small-model fallback (d_model not a multiple of the 128-lane group
        # width, e.g. the test shape): full-width row blocks, head columns are
        # sliced inside the kernel.
        n_grp = 1
        hb = h
        q_w, k_w, v_w = q_src.shape[-1], k_src.shape[-1], v_src.shape[-1]
        o_w = D
        q_cb = k_cb = v_cb = 0
        q_off, k_off, v_off = q_base, k_base, v_base

    grid = (B, n_grp, Sq // tq, Sk // tkv)

    kernel = functools.partial(
        _flash_attention_kernel, hb=hb, d_k=d_k,
        q_off=q_off, k_off=k_off, v_off=v_off)

    in_bytes = jnp.dtype(q_src.dtype).itemsize
    cost = pl.CostEstimate(
        flops=4 * B * h * Sq * Sk * d_k,
        transcendentals=B * h * Sq * Sk,
        bytes_accessed=in_bytes * B * (2 * Sq * D + 2 * Sk * D),
    )

    return pl.pallas_call(
        kernel,
        out_shape=jax.ShapeDtypeStruct((B, Sq, D), out_dtype),
        grid=grid,
        in_specs=[
            pl.BlockSpec((None, tq, q_w), lambda b, g, qi, ki: (b, qi, q_cb + g)),
            pl.BlockSpec((None, tkv, k_w), lambda b, g, qi, ki: (b, ki, k_cb + g)),
            pl.BlockSpec((None, tkv, v_w), lambda b, g, qi, ki: (b, ki, v_cb + g)),
        ],
        out_specs=pl.BlockSpec((None, tq, o_w), lambda b, g, qi, ki: (b, qi, g)),
        scratch_shapes=[
            pltpu.VMEM((hb, tq, 1), jnp.float32),     # running max per head
            pltpu.VMEM((hb, tq, 1), jnp.float32),     # running sum per head
            pltpu.VMEM((tq, hb * d_k), jnp.float32),  # output accumulator slab
        ],
        compiler_params=pltpu.CompilerParams(
            dimension_semantics=("parallel", "parallel", "parallel", "arbitrary"),
        ),
        cost_estimate=cost,
    )(q_src, k_src, v_src)


# ---------------------------------------------------------------------------
# Parameter fusion (done ONCE, not per forward call) and the MHA forward pass.
# ---------------------------------------------------------------------------
def fuse_params(params, compute_dtype=None):
    """Pre-concatenate projection weights; optionally store everything in a
    narrower compute dtype (e.g. bf16) to halve weight/activation DMA bytes."""
    (wq, bq), (wk, bk), (wv, bv), (wo, bo) = params
    cast = (lambda a: a.astype(compute_dtype)) if compute_dtype else (lambda a: a)
    return {
        "wq": cast(wq), "bq": cast(bq),
        "wk": cast(wk), "bk": cast(bk),
        "wv": cast(wv), "bv": cast(bv),
        "wo": cast(wo), "bo": cast(bo),
        "w_qkv": cast(jnp.concatenate([wq, wk, wv], axis=1)),   # (D, 3D)
        "b_qkv": cast(jnp.concatenate([bq, bk, bv], axis=0)),   # (3D,)
        "w_kv": cast(jnp.concatenate([wk, wv], axis=1)),        # (D, 2D)
        "b_kv": cast(jnp.concatenate([bk, bv], axis=0)),        # (2D,)
    }


def multi_headed_attention(fp, query, key, value, h):
    """Forward pass of MultiHeadedAttention (eval mode: dropout = identity)."""
    out_dtype = query.dtype
    cd = fp["wq"].dtype             # compute / DMA dtype (bf16 halves HBM traffic)
    B, Sq, D = query.shape
    Sk = key.shape[1]
    assert D % h == 0

    if query is key and key is value:
        # Self-attention: one fused (D, 3D) projection — x is read from HBM once.
        qkv = linear(query.astype(cd).reshape(B * Sq, D), fp["w_qkv"], fp["b_qkv"])
        qkv = qkv.reshape(B, Sq, 3 * D)
        x = flash_attention(qkv, qkv, qkv, q_base=0, k_base=D, v_base=2 * D,
                            h=h, d_model=D)
    elif key is value:
        # Cross-attention over a shared memory: fused (D, 2D) K|V projection,
        # q and kv passed straight to the attention kernel (no wrapper concat).
        q = linear(query.astype(cd).reshape(B * Sq, D), fp["wq"], fp["bq"])
        kv = linear(key.astype(cd).reshape(B * Sk, D), fp["w_kv"], fp["b_kv"])
        x = flash_attention(q.reshape(B, Sq, D), kv.reshape(B, Sk, 2 * D),
                            kv.reshape(B, Sk, 2 * D),
                            q_base=0, k_base=0, v_base=D, h=h, d_model=D)
    else:
        # Fully general case: separate projections, still no wrapper concat.
        q = linear(query.astype(cd).reshape(B * Sq, D), fp["wq"], fp["bq"])
        k = linear(key.astype(cd).reshape(B * Sk, D), fp["wk"], fp["bk"])
        v = linear(value.astype(cd).reshape(B * Sk, D), fp["wv"], fp["bv"])
        x = flash_attention(q.reshape(B, Sq, D), k.reshape(B, Sk, D),
                            v.reshape(B, Sk, D),
                            q_base=0, k_base=0, v_base=0, h=h, d_model=D)

    out = linear(x.reshape(B * Sq, D), fp["wo"], fp["bo"], out_dtype=out_dtype)
    return out.reshape(B, Sq, D)


# ---------------------------------------------------------------------------
# Pure-JAX reference for correctness checking.
# ---------------------------------------------------------------------------
def reference_mha(params, query, key, value, h):
    B, Sq, D = query.shape
    Sk = key.shape[1]
    d_k = D // h
    (wq, bq), (wk, bk), (wv, bv), (wo, bo) = params

    def project(x, w, b, S):
        y = x @ w + b
        return y.reshape(B, S, h, d_k).transpose(0, 2, 1, 3)

    q = project(query, wq, bq, Sq)
    k = project(key, wk, bk, Sk)
    v = project(value, wv, bv, Sk)
    scores = jnp.einsum("bhqd,bhkd->bhqk", q, k) / math.sqrt(d_k)
    p = jax.nn.softmax(scores, axis=-1)
    x = jnp.einsum("bhqk,bhkd->bhqd", p, v)
    x = x.transpose(0, 2, 1, 3).reshape(B, Sq, D)
    return x @ wo + bo


def init_params(key, d_model):
    """Deterministic init mimicking nn.Linear(d_model, d_model) x 4."""
    params = []
    bound = 1.0 / math.sqrt(d_model)
    for _ in range(4):
        kw, kb, key = jax.random.split(key, 3)
        # stored as (in_features, out_features) == PyTorch weight.T
        w = jax.random.uniform(kw, (d_model, d_model), jnp.float32, -bound, bound)
        b = jax.random.uniform(kb, (d_model,), jnp.float32, -bound, bound)
        params.append((w, b))
    return params


if __name__ == "__main__":
    B, S, D, H = 2, 8, 32, 4  # batch, seq, d_model, heads  (d_k = 8)

    root = jax.random.PRNGKey(0)
    kx, kq, kk, kv, kp = jax.random.split(root, 5)
    x = jax.random.normal(kx, (B, S, D), jnp.float32)
    params = init_params(kp, D)
    fp = fuse_params(params)                       # weight fusion happens once

    # 1) Self-attention (fused (D, 3D) QKV projection path).
    out_self = jax.block_until_ready(multi_headed_attention(fp, x, x, x, H))
    ref_self = reference_mha(params, x, x, x, H)
    assert out_self.shape == (B, S, D)
    assert jnp.allclose(out_self, ref_self, rtol=2e-3, atol=2e-3), "self-attn mismatch"

    # 2) Cross-attention over a shared memory (fused (D, 2D) K|V projection path).
    query = jax.random.normal(kq, (B, S, D), jnp.float32)
    memory = jax.random.normal(kk, (B, S, D), jnp.float32)
    out_mem = jax.block_until_ready(
        multi_headed_attention(fp, query, memory, memory, H))
    ref_mem = reference_mha(params, query, memory, memory, H)
    assert jnp.allclose(out_mem, ref_mem, rtol=2e-3, atol=2e-3), "kv-fused mismatch"

    # 3) Cross-attention with distinct key / value (separate projections path).
    value = jax.random.normal(kv, (B, S, D), jnp.float32)
    out_cross = jax.block_until_ready(
        multi_headed_attention(fp, query, memory, value, H))
    ref_cross = reference_mha(params, query, memory, value, H)
    assert jnp.allclose(out_cross, ref_cross, rtol=2e-3, atol=2e-3), "cross mismatch"

    # 4) bf16 weights/activations (f32 MXU accumulation) — loose tolerance.
    fp_bf16 = fuse_params(params, jnp.bfloat16)
    out_bf16 = jax.block_until_ready(multi_headed_attention(fp_bf16, x, x, x, H))
    assert jnp.allclose(out_bf16.astype(jnp.float32), ref_self,
                        rtol=1e-1, atol=1e-1), "bf16 path mismatch"

    print("KERNEL_OK")
</pallas_src>

<mosaic_0001>
module attributes {stable_mosaic.version = 11 : i64} {
  func.func @_linear_kernel(%arg0: i32, %arg1: i32, %arg2: i32, %arg3: memref<16x32xf32, #tpu.memory_space<vmem>>, %arg4: memref<32x96xf32, #tpu.memory_space<vmem>>, %arg5: memref<1x96xf32, #tpu.memory_space<vmem>>, %arg6: memref<16x96xf32, #tpu.memory_space<vmem>>, %arg7: memref<16x96xf32, #tpu.memory_space<vmem>>) attributes {dimension_semantics = [#tpu.dimension_semantics<parallel>, #tpu.dimension_semantics<parallel>, #tpu.dimension_semantics<arbitrary>], iteration_bounds = array<i64: 1, 1, 1>, scalar_prefetch = 0 : i64, scratch_operands = 1 : i64, tpu.core_type = #tpu.core_type<tc>, window_params = [{transform_indices = @transform_0, window_bounds = array<i64: 16, 32>}, {transform_indices = @transform_1, window_bounds = array<i64: 32, 96>}, {transform_indices = @transform_2, window_bounds = array<i64: 1, 96>}, {transform_indices = @transform_3, window_bounds = array<i64: 16, 96>}]} {
    %c0_i32 = arith.constant 0 : i32
    %0 = arith.cmpi eq, %arg2, %c0_i32 : i32
    %1 = arith.extui %0 : i1 to i32
    %c0_i32_0 = arith.constant 0 : i32
    %2 = arith.cmpi ne, %1, %c0_i32_0 : i32
    scf.if %2 {
      %cst_10 = arith.constant 0.000000e+00 : f32
      %12 = vector.broadcast %cst_10 : f32 to vector<16x96xf32>
      %c0_11 = arith.constant 0 : index
      %c0_12 = arith.constant 0 : index
      %13 = vector.load %arg7[%c0_11, %c0_12] : memref<16x96xf32, #tpu.memory_space<vmem>>, vector<16x96xf32>
      tpu.vector_store %arg7[%c0_11, %c0_12], %12 {strides = array<i32>} : memref<16x96xf32, #tpu.memory_space<vmem>>, vector<16x96xf32>,
    } else {
    }
    %c0 = arith.constant 0 : index
    %c0_1 = arith.constant 0 : index
    %3 = vector.load %arg7[%c0, %c0_1] : memref<16x96xf32, #tpu.memory_space<vmem>>, vector<16x96xf32>
    %c0_2 = arith.constant 0 : index
    %c0_3 = arith.constant 0 : index
    %4 = vector.load %arg3[%c0_2, %c0_3] : memref<16x32xf32, #tpu.memory_space<vmem>>, vector<16x32xf32>
    %c0_4 = arith.constant 0 : index
    %c0_5 = arith.constant 0 : index
    %5 = vector.load %arg4[%c0_4, %c0_5] : memref<32x96xf32, #tpu.memory_space<vmem>>, vector<32x96xf32>
    %cst = arith.constant dense<0.000000e+00> : vector<16x96xf32>
    %6 = tpu.matmul %4, %5, %cst {dimension_numbers = #tpu.dot_dimension_numbers<[1], [0], [0], [1], [0, 0, 1, 1], [], []>} : vector<16x32xf32>, vector<32x96xf32>, vector<16x96xf32> -> vector<16x96xf32>
    %7 = arith.addf %3, %6 : vector<16x96xf32>
    %c0_6 = arith.constant 0 : index
    %c0_7 = arith.constant 0 : index
    %8 = vector.load %arg7[%c0_6, %c0_7] : memref<16x96xf32, #tpu.memory_space<vmem>>, vector<16x96xf32>
    tpu.vector_store %arg7[%c0_6, %c0_7], %7 {strides = array<i32>} : memref<16x96xf32, #tpu.memory_space<vmem>>, vector<16x96xf32>,
    %c0_i32_8 = arith.constant 0 : i32
    %9 = arith.cmpi eq, %arg2, %c0_i32_8 : i32
    %10 = arith.extui %9 : i1 to i32
    %c0_i32_9 = arith.constant 0 : i32
    %11 = arith.cmpi ne, %10, %c0_i32_9 : i32
    scf.if %11 {
      %c0_10 = arith.constant 0 : index
      %c0_11 = arith.constant 0 : index
      %12 = vector.load %arg7[%c0_10, %c0_11] : memref<16x96xf32, #tpu.memory_space<vmem>>, vector<16x96xf32>
      %c0_12 = arith.constant 0 : index
      %c0_13 = arith.constant 0 : index
      %13 = vector.load %arg5[%c0_12, %c0_13] : memref<1x96xf32, #tpu.memory_space<vmem>>, vector<1x96xf32>
      %14 = vector.broadcast %13 : vector<1x96xf32> to vector<16x96xf32>
      %15 = arith.addf %12, %14 : vector<16x96xf32>
      %c0_14 = arith.constant 0 : index
      %c0_15 = arith.constant 0 : index
      %16 = vector.load %arg6[%c0_14, %c0_15] : memref<16x96xf32, #tpu.memory_space<vmem>>, vector<16x96xf32>
      tpu.vector_store %arg6[%c0_14, %c0_15], %15 {strides = array<i32>} : memref<16x96xf32, #tpu.memory_space<vmem>>, vector<16x96xf32>,
    } else {
    }
    return
  }
  func.func @transform_0(%arg0: i32, %arg1: i32, %arg2: i32) -> (i32, i32) {
    %c0_i32 = arith.constant 0 : i32
    return %arg0, %arg2 : i32, i32
  }
  func.func @transform_1(%arg0: i32, %arg1: i32, %arg2: i32) -> (i32, i32) {
    %c0_i32 = arith.constant 0 : i32
    return %arg2, %arg1 : i32, i32
  }
  func.func @transform_2(%arg0: i32, %arg1: i32, %arg2: i32) -> (i32, i32) {
    %c0_i32 = arith.constant 0 : i32
    %c0_i32_0 = arith.constant 0 : i32
    return %c0_i32, %arg1 : i32, i32
  }
  func.func @transform_3(%arg0: i32, %arg1: i32, %arg2: i32) -> (i32, i32) {
    %c0_i32 = arith.constant 0 : i32
    return %arg0, %arg1 : i32, i32
  }
}

</mosaic_0001>

<bundles_post_ra>
// kernel: tpu_custom_call.1
= control target key start
LH: loop header
LB: loop body
LE: loop exit
PB: predicated region body
PF: predicated region fallthrough
CT: control target
= control target key end

     0   :  { %8 = vsyncpa [#allocation4], 0  ;;  %s274_s0 = inlined_call_operand.hbm [shape: f32[16,32], index: 0, kind: input, shape index: {}]   ;;  %s275_s1 = inlined_call_operand.hbm [shape: f32[32,96], index: 1, kind: input, shape index: {}]   ;;  %s276_s2 = inlined_call_operand.vmem [shape: f32[1,96], index: 2, kind: input, shape index: {}]   ;;  %s277_s3 = inlined_call_operand.hbm [shape: f32[16,96], index: 3, kind: output, shape index: {}]  }
   0x1   :  { %9 = vsyncpa [#allocation7], 0 }
   0x2   :  { %10 = vsyncpa [#allocation5], 0  ;;  %s15_s14 = sshll.u32 %s274_s0, 4  ;;  %s221_s15 = smov [#allocation3]   ;;  %s16_s14 = int_to_ptr.hbm [resolvable:$true] %s15_s14 }
   0x3   :  { %s17_s16 = sshll.u32 %s221_s15, 4  ;;  %s28_s19 = sshll.u32 %s275_s1, 4  ;;  %s18_s16 = int_to_ptr.vmem [resolvable:$true] %s17_s16  ;;  %s29_s19 = int_to_ptr.hbm [resolvable:$true] %s28_s19 }
   0x4   :  { %s222_s20 = smov 128   ;;  %s223_s21 = smov 8  }
   0x5   :  { %23 = dma.hbm_to_vmem [thread:$0]  %s16_s14, 256, %s18_s16, [#allocation4], %s222_s20, %s222_s20, %s223_s21  }
   0x6   :  { %s224_s22 = smov [#allocation6]  }
   0x7   :  { %s30_s23 = sshll.u32 %s224_s22, 4  ;;  %s31_s23 = int_to_ptr.vmem [resolvable:$true] %s30_s23 }
   0x8   :  { %36 = dma.hbm_to_vmem [thread:$0]  %s29_s19, 512, %s31_s23, [#allocation7], %s222_s20, %s222_s20, %s223_s21  }
   0x9   :  { %215 = dma.done.wait [#allocation4], 256  }
   0xa   :  { %216 = vsyncadd [#allocation4], 4294967040 }
   0xb   :  { %217 = dma.done.wait [#allocation7], 512  }
   0xc   :  { %218 = vsyncadd [#allocation7], 4294966784  ;;  %vm51_vm0 = vcmask 785408   ;;  %v225_v0 = vmov 0.0   ;;  %v61_v1 = vld [vmem:[#allocation6 + $0x18] sm:$0xff]  ;;  %v60_v2 = vld [vmem:[#allocation6 + $0x10] sm:$0xff] }
   0xd   :  { %52 = vst.msk [vmem:[#allocation2] sm:$0xff] %vm51_vm0, %v225_v0  ;;  %81 = vmatpush.msra.mxu0 %v61_v1  ;;  %132 = vmatpush.msra.mxu1 %v61_v1  ;;  %v59_v3 = vld [vmem:[#allocation6 + $0x8] sm:$0xff]  ;;  %v58_v4 = vld [vmem:[#allocation6] sm:$0xff]  ;;  %v56_v5 = vld [vmem:[#allocation3] sm:$0xff]  ;;  %vm62_vm1 = vcmask 261120   ;;  %s226_s24 = smov [#allocation8]  }
   0xe   :  { %53 = vst.msk [vmem:[#allocation2 + $0x8] sm:$0xff] %vm51_vm0, %v225_v0  ;;  %v57_v6 = vld [vmem:[#allocation3 + $0x8] sm:$0xff]  ;;  %v142_v13 = vld [vmem:[%s276_s2] ss:$0 sm:$0xff]  ;;  %s114_s25 = sshll.u32 %s226_s24, 4  ;;  %s116_s28 = sshll.u32 %s277_s3, 4  ;;  %s115_s25 = int_to_ptr.vmem [resolvable:$true] %s114_s25  ;;  %s117_s28 = int_to_ptr.hbm [resolvable:$true] %s116_s28 }
   0xf   :  { %82 = vmatpush.msra.mxu0 %v60_v2  ;;  %133 = vmatpush.msra.mxu1 %v60_v2 }
  0x11   :  { %83 = vmatpush.msra.mxu0 %v59_v3  ;;  %134 = vmatpush.msra.mxu1 %v59_v3 }
  0x13   :  { %84 = vmatpush.msra.mxu0 %v58_v4  ;;  %135 = vmatpush.msra.mxu1 %v58_v4 }
  0x14   :  { %130 = vmatmul.msk.f32.vlgmr.msra.gmra.mxu0 %vm62_vm1, %v56_v5  ;;  %131 = vmatmul.msk.f32.vlgmr.msra.gmra.mxu1 %vm62_vm1, %v57_v6  ;;  %v54_v7 = vld [vmem:[#allocation2] sm:$0xff] }
  0x15   :  { %v55_v8 = vld [vmem:[#allocation2 + $0x8] sm:$0xff] }
  0x91   :  { %v86_v9 = vpop.f32.mrf.mxu0  ;;  %v89_v10 = vpop.f32.mrf.mxu1 }
  0x92   :  { %v92_v11 = vadd.f32 %v86_v9, %v54_v7  ;;  %v93_v12 = vadd.f32 %v89_v10, %v55_v8 }
  0x94   :  { %95 = vst.msk [vmem:[#allocation2] sm:$0xff] %vm51_vm0, %v92_v11 }
  0x95   :  { %96 = vst.msk [vmem:[#allocation2 + $0x8] sm:$0xff] %vm51_vm0, %v93_v12 }
  0x9b   :  { %v100_v14 = vld [vmem:[#allocation2] sm:$0xff] }
  0x9c   :  { %v101_v15 = vld [vmem:[#allocation2 + $0x8] sm:$0xff]  ;;  %v106_v16 = vadd.f32 %v142_v13, %v100_v14 }
  0x9d   :  { %v107_v17 = vadd.f32 %v142_v13, %v101_v15 }
  0x9e   :  { %108 = vst.msk [vmem:[#allocation8] sm:$0xff] %vm51_vm0, %v106_v16 }
  0x9f   :  { %109 = vst.msk [vmem:[#allocation8 + $0x8] sm:$0xff] %vm51_vm0, %v107_v17 }
  0xa0   :  { %122 = dma.vmem_to_hbm [thread:$0]  %s115_s25, 256, %s117_s28, [#allocation5], %s222_s20, %s222_s20, %s223_s21  }
  0xa1   :  { %219 = dma.done.wait [#allocation5], 256  }
  0xa2   :  { %220 = vsyncadd [#allocation5], 4294967040 }
  0xa3   :  { %127 = vsyncpa [#allocation4], 1 }
  0xa4   :  { %128 = vsyncpa [#allocation7], 1 }
  0xa5   :  { %129 = vsyncpa [#allocation5], 1 }

</bundles_post_ra>
